<compile_context>
chip_gen: v5e
topology: v5e:2x2
jax: 0.10.0
libtpu: 0.0.40
codegen_flags: <defaults>
</compile_context>

<pallas_src>
import jax
import jax.numpy as jnp
import numpy as np
from jax.experimental import pallas as pl
from jax.experimental.pallas import tpu as pltpu


# ---------------------------------------------------------------------------
# Pallas kernel: cross_attn(text_keys, audio_query), cross_attn(audio_keys,
# text_query), concat, fc — for a whole batch chunk in one grid step.
# ---------------------------------------------------------------------------
def _cross_attn_fc_kernel(key_t_ref, q_a_ref, key_a_ref, q_t_ref,
                          w_fc_ref, b_fc_ref, out_ref):
    key_t = key_t_ref[...]      # (BB, Tt, D)
    q_a   = q_a_ref[...]        # (BB, 1, D)
    key_a = key_a_ref[...]      # (BB, Ta, D)
    q_t   = q_t_ref[...]        # (BB, 1, D)

    bb = key_t.shape[0]
    d = key_t.shape[-1]
    c = out_ref.shape[-1]

    def cross_attn(key, q):
        # Lane-major scores: (BB, 1, T); softmax reduces across lanes.
        s = jnp.einsum('bqd,bkd->bqk', q, key,
                       preferred_element_type=jnp.float32)          # (BB, 1, T)
        m = jnp.max(s, axis=-1, keepdims=True)                      # (BB, 1, 1)
        e = jnp.exp(s - m)                                          # (BB, 1, T)
        inv = pl.reciprocal(jnp.sum(e, axis=-1, keepdims=True), approx=True)
        w = e * inv                                                 # (BB, 1, T)
        # Weighted sum of keys: (BB, 1, D)
        return jnp.einsum('bqk,bkd->bqd', w, key,
                          preferred_element_type=jnp.float32)

    a2t = cross_attn(key_t, q_a).reshape(bb, d)   # audio_to_text (BB, D)
    t2a = cross_attn(key_a, q_t).reshape(bb, d)   # text_to_audio (BB, D)

    # fc(cat([a2t, t2a], dim=1)) == a2t @ W[:D] + t2a @ W[D:] + b,
    # batched over the whole chunk -> two MXU matmuls total (not 2*B).
    logits = (jnp.dot(a2t, w_fc_ref[:d, :], preferred_element_type=jnp.float32)
              + jnp.dot(t2a, w_fc_ref[d:, :], preferred_element_type=jnp.float32)
              + b_fc_ref[...])                                      # (BB, C)
    out_ref[...] = logits.reshape(bb, 1, c).astype(out_ref.dtype)


def cross_attn_fc(key_text, q_audio, key_audio, q_text, w_fc, b_fc,
                  *, batch_chunks=1):
    """key_*: (B, T, D); q_*: (B, D); w_fc: (2D, C); b_fc: (C,) -> (B, C).

    batch_chunks=1 processes the whole batch in one invocation (best on
    v5e/v6e single-TC); set batch_chunks=2 on v7x with larger B so the
    "parallel" grid axis spans both TensorCores.
    """
    B, Tt, D = key_text.shape
    _, Ta, _ = key_audio.shape
    C = w_fc.shape[1]
    assert B % batch_chunks == 0
    BB = B // batch_chunks

    q_audio = q_audio.reshape(B, 1, D)
    q_text = q_text.reshape(B, 1, D)
    b_fc2 = b_fc.reshape(1, C)

    out = pl.pallas_call(
        _cross_attn_fc_kernel,
        out_shape=jax.ShapeDtypeStruct((B, 1, C), jnp.float32),
        grid_spec=pltpu.PrefetchScalarGridSpec(
            num_scalar_prefetch=0,
            grid=(batch_chunks,),
            in_specs=[
                pl.BlockSpec((BB, Tt, D), lambda i: (i, 0, 0)),
                pl.BlockSpec((BB, 1, D), lambda i: (i, 0, 0)),
                pl.BlockSpec((BB, Ta, D), lambda i: (i, 0, 0)),
                pl.BlockSpec((BB, 1, D), lambda i: (i, 0, 0)),
                pl.BlockSpec((2 * D, C), lambda i: (0, 0)),
                pl.BlockSpec((1, C), lambda i: (0, 0)),
            ],
            out_specs=pl.BlockSpec((BB, 1, C), lambda i: (i, 0, 0)),
        ),
        compiler_params=pltpu.CompilerParams(
            dimension_semantics=("parallel",)),
    )(key_text, q_audio, key_audio, q_text, w_fc, b_fc2)
    return out.reshape(B, C)


# ---------------------------------------------------------------------------
# Deterministic stand-in encoders (plain JAX glue).
# ---------------------------------------------------------------------------
def text_encoder(text_input, text_mask, Wt, Vt):
    h = jnp.tanh(jnp.einsum('bti,id->btd', text_input, Wt))        # (B, Tt, 2H)
    h = h * text_mask[..., None]
    denom = jnp.clip(jnp.sum(text_mask, axis=1, keepdims=True), 1.0, None)
    pooled = jnp.sum(h, axis=1) / denom                            # (B, 2H)
    attn = jnp.tanh(pooled @ Vt)                                   # (B, 2H)
    return h, attn


def audio_encoder(audio_input, Wa, Va):
    h = jnp.tanh(jnp.einsum('bti,id->btd', audio_input, Wa))       # (B, Ta, 2H)
    pooled = jnp.mean(h, axis=1)                                   # (B, 2H)
    attn = jnp.tanh(pooled @ Va)                                   # (B, 2H)
    return h, attn


# ---------------------------------------------------------------------------
# Pure-JAX reference of the multiModel forward tail (for correctness check).
# ---------------------------------------------------------------------------
def reference_tail(key_text, q_audio, key_audio, q_text, w_fc, b_fc):
    def ca(key, q):
        att = jnp.einsum('btd,bd->bt', key, q)
        w = jax.nn.softmax(att, axis=1)
        return jnp.einsum('btd,bt->bd', key, w)
    a2t = ca(key_text, q_audio)
    t2a = ca(key_audio, q_text)
    feat = jnp.concatenate([a2t, t2a], axis=1)
    return feat @ w_fc + b_fc


if __name__ == "__main__":
    # multiModel(input_size_audio=12, input_size_text=10, hidden_size=16,
    #            num_layers=1, num_classes=4)
    B, Tt, Ta = 2, 8, 8
    in_text, in_audio, hidden, num_classes = 10, 12, 16, 4
    D = 2 * hidden                      # bi-LSTM-style output width

    key = jax.random.PRNGKey(0)
    ks = jax.random.split(key, 8)

    text_input = jax.random.normal(ks[0], (B, Tt, in_text), jnp.float32)
    text_mask = jnp.ones((B, Tt), jnp.float32).at[:, Tt - 2:].set(0.0)
    audio_input = jax.random.normal(ks[1], (B, Ta, in_audio), jnp.float32)

    # deterministic parameters
    Wt = jax.random.normal(ks[2], (in_text, D), jnp.float32) * 0.1
    Vt = jax.random.normal(ks[3], (D, D), jnp.float32) * 0.1
    Wa = jax.random.normal(ks[4], (in_audio, D), jnp.float32) * 0.1
    Va = jax.random.normal(ks[5], (D, D), jnp.float32) * 0.1
    W_fc = jax.random.normal(ks[6], (4 * hidden, num_classes), jnp.float32) * 0.1
    b_fc = jax.random.normal(ks[7], (num_classes,), jnp.float32) * 0.1

    # encoders (glue)
    output_text, output_text_attn = text_encoder(text_input, text_mask, Wt, Vt)
    output_audio, output_audio_attn = audio_encoder(audio_input, Wa, Va)

    # Pallas hot path: two cross-attentions + concat + fc (whole batch at once)
    out = cross_attn_fc(output_text, output_audio_attn,
                        output_audio, output_text_attn, W_fc, b_fc,
                        batch_chunks=1)
    out = jax.block_until_ready(out)

    ref = reference_tail(output_text, output_audio_attn,
                         output_audio, output_text_attn, W_fc, b_fc)
    # tolerance covers pl.reciprocal(approx=True) in the softmax denominator
    np.testing.assert_allclose(np.asarray(out), np.asarray(ref),
                               rtol=1e-3, atol=1e-3)
    print("KERNEL_OK")
</pallas_src>

<mosaic_0001>
module attributes {stable_mosaic.version = 11 : i64} {
  func.func @_cross_attn_fc_kernel(%arg0: i32, %arg1: memref<2x8x32xf32, #tpu.memory_space<vmem>>, %arg2: memref<2x1x32xf32, #tpu.memory_space<vmem>>, %arg3: memref<2x8x32xf32, #tpu.memory_space<vmem>>, %arg4: memref<2x1x32xf32, #tpu.memory_space<vmem>>, %arg5: memref<64x4xf32, #tpu.memory_space<vmem>>, %arg6: memref<1x4xf32, #tpu.memory_space<vmem>>, %arg7: memref<2x1x4xf32, #tpu.memory_space<vmem>>) attributes {dimension_semantics = [#tpu.dimension_semantics<parallel>], iteration_bounds = array<i64: 1>, scalar_prefetch = 0 : i64, scratch_operands = 0 : i64, tpu.core_type = #tpu.core_type<tc>, window_params = [{transform_indices = @transform_0, window_bounds = array<i64: 2, 8, 32>}, {transform_indices = @transform_1, window_bounds = array<i64: 2, 1, 32>}, {transform_indices = @transform_2, window_bounds = array<i64: 2, 8, 32>}, {transform_indices = @transform_3, window_bounds = array<i64: 2, 1, 32>}, {pipeline_mode = #tpu.pipeline_mode<synchronous>, transform_indices = @transform_4, window_bounds = array<i64: 64, 4>}, {pipeline_mode = #tpu.pipeline_mode<synchronous>, transform_indices = @transform_5, window_bounds = array<i64: 1, 4>}, {transform_indices = @transform_6, window_bounds = array<i64: 2, 1, 4>}]} {
    %c0 = arith.constant 0 : index
    %c0_0 = arith.constant 0 : index
    %c0_1 = arith.constant 0 : index
    %0 = vector.load %arg1[%c0, %c0_0, %c0_1] : memref<2x8x32xf32, #tpu.memory_space<vmem>>, vector<2x8x32xf32>
    %c0_2 = arith.constant 0 : index
    %c0_3 = arith.constant 0 : index
    %c0_4 = arith.constant 0 : index
    %1 = vector.load %arg2[%c0_2, %c0_3, %c0_4] : memref<2x1x32xf32, #tpu.memory_space<vmem>>, vector<2x1x32xf32>
    %c0_5 = arith.constant 0 : index
    %c0_6 = arith.constant 0 : index
    %c0_7 = arith.constant 0 : index
    %2 = vector.load %arg3[%c0_5, %c0_6, %c0_7] : memref<2x8x32xf32, #tpu.memory_space<vmem>>, vector<2x8x32xf32>
    %c0_8 = arith.constant 0 : index
    %c0_9 = arith.constant 0 : index
    %c0_10 = arith.constant 0 : index
    %3 = vector.load %arg4[%c0_8, %c0_9, %c0_10] : memref<2x1x32xf32, #tpu.memory_space<vmem>>, vector<2x1x32xf32>
    "tpu.trace_start"() <{level = 10 : i32, message = "bqd,bkd->bqk"}> : () -> ()
    %cst = arith.constant dense<0.000000e+00> : vector<2x1x8xf32>
    %4 = tpu.matmul %1, %0, %cst {dimension_numbers = #tpu.dot_dimension_numbers<[2], [2], [1], [1], [0, 0, 0, 1, 1, 1], [0], [0]>} : vector<2x1x32xf32>, vector<2x8x32xf32>, vector<2x1x8xf32> -> vector<2x1x8xf32>
    "tpu.trace_stop"() : () -> ()
    %cst_11 = arith.constant dense<0xFF800000> : vector<2x1xf32>
    %5 = vector.multi_reduction <maximumf>, %4, %cst_11 [2] : vector<2x1x8xf32> to vector<2x1xf32>
    %6 = vector.shape_cast %5 : vector<2x1xf32> to vector<2x1x1xf32>
    %7 = vector.broadcast %6 : vector<2x1x1xf32> to vector<2x1x8xf32>
    %8 = arith.subf %4, %7 : vector<2x1x8xf32>
    %9 = math.exp %8 : vector<2x1x8xf32>
    %cst_12 = arith.constant dense<0.000000e+00> : vector<2x1xf32>
    %10 = vector.multi_reduction <add>, %9, %cst_12 [2] : vector<2x1x8xf32> to vector<2x1xf32>
    %11 = vector.shape_cast %10 : vector<2x1xf32> to vector<2x1x1xf32>
    %12 = tpu.reciprocal %11 {approx = true} : vector<2x1x1xf32> -> vector<2x1x1xf32>
    %13 = vector.broadcast %12 : vector<2x1x1xf32> to vector<2x1x8xf32>
    %14 = arith.mulf %9, %13 : vector<2x1x8xf32>
    "tpu.trace_start"() <{level = 10 : i32, message = "bqk,bkd->bqd"}> : () -> ()
    %cst_13 = arith.constant dense<0.000000e+00> : vector<2x1x32xf32>
    %15 = tpu.matmul %14, %0, %cst_13 {dimension_numbers = #tpu.dot_dimension_numbers<[2], [1], [1], [2], [0, 0, 0, 1, 1, 2], [0], [0]>} : vector<2x1x8xf32>, vector<2x8x32xf32>, vector<2x1x32xf32> -> vector<2x1x32xf32>
    "tpu.trace_stop"() : () -> ()
    %16 = vector.shape_cast %15 : vector<2x1x32xf32> to vector<2x32xf32>
    "tpu.trace_start"() <{level = 10 : i32, message = "bqd,bkd->bqk"}> : () -> ()
    %cst_14 = arith.constant dense<0.000000e+00> : vector<2x1x8xf32>
    %17 = tpu.matmul %3, %2, %cst_14 {dimension_numbers = #tpu.dot_dimension_numbers<[2], [2], [1], [1], [0, 0, 0, 1, 1, 1], [0], [0]>} : vector<2x1x32xf32>, vector<2x8x32xf32>, vector<2x1x8xf32> -> vector<2x1x8xf32>
    "tpu.trace_stop"() : () -> ()
    %cst_15 = arith.constant dense<0xFF800000> : vector<2x1xf32>
    %18 = vector.multi_reduction <maximumf>, %17, %cst_15 [2] : vector<2x1x8xf32> to vector<2x1xf32>
    %19 = vector.shape_cast %18 : vector<2x1xf32> to vector<2x1x1xf32>
    %20 = vector.broadcast %19 : vector<2x1x1xf32> to vector<2x1x8xf32>
    %21 = arith.subf %17, %20 : vector<2x1x8xf32>
    %22 = math.exp %21 : vector<2x1x8xf32>
    %cst_16 = arith.constant dense<0.000000e+00> : vector<2x1xf32>
    %23 = vector.multi_reduction <add>, %22, %cst_16 [2] : vector<2x1x8xf32> to vector<2x1xf32>
    %24 = vector.shape_cast %23 : vector<2x1xf32> to vector<2x1x1xf32>
    %25 = tpu.reciprocal %24 {approx = true} : vector<2x1x1xf32> -> vector<2x1x1xf32>
    %26 = vector.broadcast %25 : vector<2x1x1xf32> to vector<2x1x8xf32>
    %27 = arith.mulf %22, %26 : vector<2x1x8xf32>
    "tpu.trace_start"() <{level = 10 : i32, message = "bqk,bkd->bqd"}> : () -> ()
    %cst_17 = arith.constant dense<0.000000e+00> : vector<2x1x32xf32>
    %28 = tpu.matmul %27, %2, %cst_17 {dimension_numbers = #tpu.dot_dimension_numbers<[2], [1], [1], [2], [0, 0, 0, 1, 1, 2], [0], [0]>} : vector<2x1x8xf32>, vector<2x8x32xf32>, vector<2x1x32xf32> -> vector<2x1x32xf32>
    "tpu.trace_stop"() : () -> ()
    %29 = vector.shape_cast %28 : vector<2x1x32xf32> to vector<2x32xf32>
    %c0_18 = arith.constant 0 : index
    %c0_19 = arith.constant 0 : index
    %30 = vector.load %arg5[%c0_18, %c0_19] : memref<64x4xf32, #tpu.memory_space<vmem>>, vector<32x4xf32>
    %cst_20 = arith.constant dense<0.000000e+00> : vector<2x4xf32>
    %31 = tpu.matmul %16, %30, %cst_20 {dimension_numbers = #tpu.dot_dimension_numbers<[1], [0], [0], [1], [0, 0, 1, 1], [], []>} : vector<2x32xf32>, vector<32x4xf32>, vector<2x4xf32> -> vector<2x4xf32>
    %c32 = arith.constant 32 : index
    %c0_21 = arith.constant 0 : index
    %32 = vector.load %arg5[%c32, %c0_21] : memref<64x4xf32, #tpu.memory_space<vmem>>, vector<32x4xf32>
    %cst_22 = arith.constant dense<0.000000e+00> : vector<2x4xf32>
    %33 = tpu.matmul %29, %32, %cst_22 {dimension_numbers = #tpu.dot_dimension_numbers<[1], [0], [0], [1], [0, 0, 1, 1], [], []>} : vector<2x32xf32>, vector<32x4xf32>, vector<2x4xf32> -> vector<2x4xf32>
    %34 = arith.addf %31, %33 : vector<2x4xf32>
    %c0_23 = arith.constant 0 : index
    %c0_24 = arith.constant 0 : index
    %35 = vector.load %arg6[%c0_23, %c0_24] : memref<1x4xf32, #tpu.memory_space<vmem>>, vector<1x4xf32>
    %36 = vector.broadcast %35 : vector<1x4xf32> to vector<2x4xf32>
    %37 = arith.addf %34, %36 : vector<2x4xf32>
    %38 = vector.shape_cast %37 : vector<2x4xf32> to vector<2x1x4xf32>
    %c0_25 = arith.constant 0 : index
    %c0_26 = arith.constant 0 : index
    %c0_27 = arith.constant 0 : index
    %39 = vector.load %arg7[%c0_25, %c0_26, %c0_27] : memref<2x1x4xf32, #tpu.memory_space<vmem>>, vector<2x1x4xf32>
    tpu.vector_store %arg7[%c0_25, %c0_26, %c0_27], %38 {strides = array<i32>} : memref<2x1x4xf32, #tpu.memory_space<vmem>>, vector<2x1x4xf32>,
    return
  }
  func.func @transform_0(%arg0: i32) -> (i32, i32, i32) {
    %c0_i32 = arith.constant 0 : i32
    %c0_i32_0 = arith.constant 0 : i32
    %c0_i32_1 = arith.constant 0 : i32
    return %arg0, %c0_i32, %c0_i32_0 : i32, i32, i32
  }
  func.func @transform_1(%arg0: i32) -> (i32, i32, i32) {
    %c0_i32 = arith.constant 0 : i32
    %c0_i32_0 = arith.constant 0 : i32
    %c0_i32_1 = arith.constant 0 : i32
    return %arg0, %c0_i32, %c0_i32_0 : i32, i32, i32
  }
  func.func @transform_2(%arg0: i32) -> (i32, i32, i32) {
    %c0_i32 = arith.constant 0 : i32
    %c0_i32_0 = arith.constant 0 : i32
    %c0_i32_1 = arith.constant 0 : i32
    return %arg0, %c0_i32, %c0_i32_0 : i32, i32, i32
  }
  func.func @transform_3(%arg0: i32) -> (i32, i32, i32) {
    %c0_i32 = arith.constant 0 : i32
    %c0_i32_0 = arith.constant 0 : i32
    %c0_i32_1 = arith.constant 0 : i32
    return %arg0, %c0_i32, %c0_i32_0 : i32, i32, i32
  }
  func.func @transform_4(%arg0: i32) -> (i32, i32) {
    %c0_i32 = arith.constant 0 : i32
    %c0_i32_0 = arith.constant 0 : i32
    %c0_i32_1 = arith.constant 0 : i32
    return %c0_i32, %c0_i32_0 : i32, i32
  }
  func.func @transform_5(%arg0: i32) -> (i32, i32) {
    %c0_i32 = arith.constant 0 : i32
    %c0_i32_0 = arith.constant 0 : i32
    %c0_i32_1 = arith.constant 0 : i32
    return %c0_i32, %c0_i32_0 : i32, i32
  }
  func.func @transform_6(%arg0: i32) -> (i32, i32, i32) {
    %c0_i32 = arith.constant 0 : i32
    %c0_i32_0 = arith.constant 0 : i32
    %c0_i32_1 = arith.constant 0 : i32
    return %arg0, %c0_i32, %c0_i32_0 : i32, i32, i32
  }
}

</mosaic_0001>

<bundles_post_ra>
// kernel: tpu_custom_call.1
= control target key start
LH: loop header
LB: loop body
LE: loop exit
PB: predicated region body
PF: predicated region fallthrough
CT: control target
= control target key end

     0   :  { %vm32_vm0 = vcmask 261120   ;;  %s541_s0 = inlined_call_operand.vmem [shape: f32[2,8,32], index: 0, kind: input, shape index: {}]   ;;  %s542_s1 = inlined_call_operand.vmem [shape: f32[2,1,32], index: 1, kind: input, shape index: {}]   ;;  %s543_s2 = inlined_call_operand.vmem [shape: f32[2,8,32], index: 2, kind: input, shape index: {}]   ;;  %s544_s3 = inlined_call_operand.vmem [shape: f32[2,1,32], index: 3, kind: input, shape index: {}]   ;;  %s545_s4 = inlined_call_operand.vmem [shape: f32[64,4], index: 4, kind: input, shape index: {}]   ;;  %s546_s5 = inlined_call_operand.vmem [shape: f32[1,4], index: 5, kind: input, shape index: {}]   ;;  %s547_s6 = inlined_call_operand.hbm [shape: f32[2,1,4], index: 6, kind: output, shape index: {}]  }
   0x1   :  { %v25_v0 = vld [vmem:[%s541_s0 + $0x8] sm:$0xff]  ;;  %v27_v1 = vld [vmem:[%s542_s1 + $0x1] sm:$0x1]  ;;  %v26_v3 = vld [vmem:[%s542_s1] sm:$0x1] }
   0x2   :  { %v24_v2 = vld [vmem:[%s541_s0] sm:$0xff]  ;;  %367 = vmatpush.xpose.msk.msra.mxu1 %vm32_vm0, %v25_v0 }
   0x3   :  { %365 = vmatpush.xpose.msk.msra.mxu0 %vm32_vm0, %v24_v2 }
   0x4   :  { %11 = vsyncpa [#allocation3], 0  ;;  %150 = vmatpush.msra.mxu3 %v25_v0  ;;  %127 = vmatpush.msra.mxu2 %v24_v2  ;;  %vm85_vm1 = vcmask 57344   ;;  %v29_v18 = vld [vmem:[%s543_s2 + $0x8] sm:$0xff]  ;;  %v28_v19 = vld [vmem:[%s543_s2] sm:$0xff]  ;;  %vm108_vm2 = vcmask 64512  }
   0x5   :  { %368 = vmatmul.msk.f32.vlgmr.msra.gmra.mxu1 %vm32_vm0, %v27_v1  ;;  %v31_v25 = vld [vmem:[%s544_s3 + $0x1] sm:$0x1]  ;;  %v30_v27 = vld [vmem:[%s544_s3] sm:$0x1]  ;;  %v278_v28 = vld [vmem:[%s545_s4 + $0x18] sm:$0xff]  ;;  %vm286_vm3 = vcmask 1041409  }
   0x6   :  { %366 = vmatmul.msk.f32.vlgmr.msra.gmra.mxu0 %vm32_vm0, %v26_v3  ;;  %373 = vmatpush.xpose.msk.msrb.mxu3 %vm32_vm0, %v29_v18  ;;  %v277_v29 = vld [vmem:[%s545_s4 + $0x10] sm:$0xff]  ;;  %v276_v30 = vld [vmem:[%s545_s4 + $0x8] sm:$0xff]  ;;  %v275_v31 = vld [vmem:[%s545_s4] sm:$0xff]  ;;  %s425_s27 = smov [#allocation2]   ;;  %vm344_vm4 = vcmask 24576   ;;  %s426_s29 = smov 16  }
   0x7   :  { %270 = vmatpush.msrb.mxu1 %v29_v18  ;;  %371 = vmatpush.xpose.msk.msrb.mxu2 %vm32_vm0, %v28_v19  ;;  %v282_v56 = vld [vmem:[%s545_s4 + $0x38] sm:$0xff]  ;;  %v281_v57 = vld [vmem:[%s545_s4 + $0x30] sm:$0xff]  ;;  %v280_v58 = vld [vmem:[%s545_s4 + $0x28] sm:$0xff]  ;;  %s351_s28 = sshll.u32 %s425_s27, 4  ;;  %s427_s30 = smov 1   ;;  %s352_s28 = int_to_ptr.vmem [resolvable:$true] %s351_s28 }
   0x8   :  { %247 = vmatpush.msrb.mxu0 %v28_v19  ;;  %v279_v59 = vld [vmem:[%s545_s4 + $0x20] sm:$0xff]  ;;  %s353_s4 = sshll.u32 %s547_s6, 4  ;;  %s354_s4 = int_to_ptr.hbm [resolvable:$true] %s353_s4 }
   0x9   :  { %v382_v0 = vld [vmem:[%s546_s5] ss:$0 sm:$0xff] }
  0x82   :  { %v82_v4 = vpop.f32.mrf.mxu1 }
  0x83   :  { %v89_v5 = vsel %vm85_vm1, %v82_v4, -inf  ;;  %v56_v6 = vpop.f32.mrf.mxu0 }
  0x84   :  { %90 = vmax.xlane.f32.xlu0 %v89_v5  ;;  %v86_v7 = vsel %vm85_vm1, %v56_v6, -inf }
  0x8c   :  { %87 = vmax.xlane.f32.xlu0 %v86_v7 }
  0xf7   :  { %v91_v8 = vpop.xlane.xlu0 %90 }
  0xf8   :  { %v93_v9 = vsub.f32 %v82_v4, %v91_v8 }
  0xfa   :  { %v96_v10 = vmul.f32 1.442695, %v93_v9 }
  0xfc   :  { %383 = vpow2.f32 %v96_v10 }
  0xff   :  { %v88_v11 = vpop.xlane.xlu0 %87 }
 0x100   :  { %v92_v12 = vsub.f32 %v56_v6, %v88_v11 }
 0x102   :  { %v384_v13 = vpop.eup %383  ;;  %v94_v14 = vmul.f32 1.442695, %v92_v12 }
 0x103   :  { %v101_v15 = vsel %vm85_vm1, %v384_v13, 0.0 }
 0x104   :  { %385 = vpow2.f32 %v94_v14  ;;  %102 = vadd.xlane.f32.xlu1 %v101_v15 }
 0x10a   :  { %v386_v16 = vpop.eup %385 }
 0x10b   :  { %v98_v17 = vsel %vm85_vm1, %v386_v16, 0.0 }
 0x10c   :  { %99 = vadd.xlane.f32.xlu1 %v98_v17 }
 0x177   :  { %v103_v20 = vpop.xlane.xlu1 %102 }
 0x178   :  { %387 = vrcp.f32 %v103_v20 }
 0x17e   :  { %v388_v21 = vpop.eup %387 }
 0x17f   :  { %v100_v22 = vpop.xlane.xlu1 %99  ;;  %v107_v23 = vmul.f32 %v388_v21, %v384_v13 }
 0x180   :  { %389 = vrcp.f32 %v100_v22 }
 0x181   :  { %370 = vmatmul.msk.f32.vlgmr.msra.gmra.mxu3 %vm108_vm2, %v107_v23 }
 0x182   :  { %328 = vmatpush.msra.mxu3 %v278_v28 }
 0x184   :  { %329 = vmatpush.msra.mxu3 %v277_v29 }
 0x186   :  { %v390_v24 = vpop.eup %389  ;;  %330 = vmatpush.msra.mxu3 %v276_v30 }
 0x187   :  { %v106_v26 = vmul.f32 %v390_v24, %v386_v16 }
 0x188   :  { %331 = vmatpush.msra.mxu3 %v275_v31 }
 0x189   :  { %369 = vmatmul.msk.f32.vlgmr.msra.gmra.mxu2 %vm108_vm2, %v106_v26  ;;  %374 = vmatmul.msk.f32.vlgmr.msrb.gmra.mxu3 %vm32_vm0, %v31_v25 }
 0x18a   :  { %302 = vmatpush.msra.mxu2 %v282_v56 }
 0x18c   :  { %303 = vmatpush.msra.mxu2 %v281_v57 }
 0x18e   :  { %304 = vmatpush.msra.mxu2 %v280_v58 }
 0x190   :  { %305 = vmatpush.msra.mxu2 %v279_v59 }
 0x191   :  { %372 = vmatmul.msk.f32.vlgmr.msrb.gmra.mxu2 %vm32_vm0, %v30_v27 }
 0x204   :  { %v152_v32 = vpop.f32.mrf.mxu3 }
 0x205   :  { %v312_v33 = vrot.slane %v152_v32, 7 }
 0x20c   :  { %v129_v34 = vpop.f32.mrf.mxu2  ;;  %v204_v35 = vpop.f32.mrf.mxu3 }
 0x20d   :  { %v313_v36 = vsel %vm286_vm3, %v312_v33, %v129_v34  ;;  %v210_v37 = vsel %vm85_vm1, %v204_v35, -inf }
 0x20e   :  { %211 = vmax.xlane.f32.xlu2 %v210_v37  ;;  %378 = vmatmul.msk.f32.vlgmr.msra.gmra.mxu3 %vm32_vm0, %v313_v36 }
 0x214   :  { %v178_v38 = vpop.f32.mrf.mxu2 }
 0x215   :  { %v207_v39 = vsel %vm85_vm1, %v178_v38, -inf }
 0x216   :  { %208 = vmax.xlane.f32.xlu2 %v207_v39 }
 0x281   :  { %v212_v40 = vpop.xlane.xlu2 %211 }
 0x282   :  { %v214_v41 = vsub.f32 %v204_v35, %v212_v40 }
 0x284   :  { %v217_v42 = vmul.f32 1.442695, %v214_v41 }
 0x286   :  { %391 = vpow2.f32 %v217_v42 }
 0x289   :  { %v209_v43 = vpop.xlane.xlu2 %208 }
 0x28a   :  { %v213_v44 = vsub.f32 %v178_v38, %v209_v43 }
 0x28c   :  { %v392_v45 = vpop.eup %391  ;;  %v215_v46 = vmul.f32 1.442695, %v213_v44 }
 0x28d   :  { %v222_v47 = vsel %vm85_vm1, %v392_v45, 0.0 }
 0x28e   :  { %393 = vpow2.f32 %v215_v46  ;;  %223 = vadd.xlane.f32.xlu0 %v222_v47 }
 0x291   :  { %v333_v1 = vpop.f32.mrf.mxu3 }
 0x294   :  { %v394_v48 = vpop.eup %393 }
 0x295   :  { %v219_v49 = vsel %vm85_vm1, %v394_v48, 0.0 }
 0x296   :  { %220 = vadd.xlane.f32.xlu1 %v219_v49 }
 0x301   :  { %v224_v50 = vpop.xlane.xlu0 %223 }
 0x302   :  { %395 = vrcp.f32 %v224_v50 }
 0x308   :  { %v396_v51 = vpop.eup %395 }
 0x309   :  { %v228_v52 = vmul.f32 %v396_v51, %v392_v45  ;;  %v221_v53 = vpop.xlane.xlu1 %220 }
 0x30a   :  { %397 = vrcp.f32 %v221_v53 }
 0x30b   :  { %376 = vmatmul.msk.f32.vlgmr.msrb.gmra.mxu1 %vm108_vm2, %v228_v52 }
 0x310   :  { %v398_v54 = vpop.eup %397 }
 0x311   :  { %v227_v55 = vmul.f32 %v398_v54, %v394_v48 }
 0x313   :  { %375 = vmatmul.msk.f32.vlgmr.msrb.gmra.mxu0 %vm108_vm2, %v227_v55 }
 0x388   :  { %v272_v60 = vpop.f32.mrf.mxu1 }
 0x389   :  { %v285_v61 = vrot.slane %v272_v60, 7 }
 0x390   :  { %v249_v62 = vpop.f32.mrf.mxu0 }
 0x391   :  { %v287_v63 = vsel %vm286_vm3, %v285_v61, %v249_v62 }
 0x392   :  { %377 = vmatmul.msk.f32.vlgmr.msra.gmra.mxu2 %vm32_vm0, %v287_v63 }
 0x415   :  { %v307_v2 = vpop.f32.mrf.mxu2 }
 0x416   :  { %v334_v3 = vadd.f32 %v333_v1, %v307_v2 }
 0x418   :  { %v340_v4 = vadd.f32 %v382_v0, %v334_v3 }
 0x41a   :  { %v342_v5 = vrot.slane %v340_v4, 1  ;;  %345 = vst.msk [vmem:[#allocation2] sm:$0x1] %vm344_vm4, %v340_v4 }
 0x41c   :  { %346 = vst.msk [vmem:[#allocation2 + $0x1] sm:$0x1] %vm344_vm4, %v342_v5 }
 0x41d   :  { %359 = dma.vmem_to_hbm [thread:$0]  %s352_s28, 32, %s354_s4, [#allocation3], %s426_s29, %s426_s29, %s427_s30  }
 0x41e   :  { %423 = dma.done.wait [#allocation3], 32  }
 0x41f   :  { %424 = vsyncadd [#allocation3], 4294967264 }
 0x420   :  { %364 = vsyncpa [#allocation3], 1 }

</bundles_post_ra>
